<compile_context>
chip_gen: v5e
topology: v5e:2x2
jax: 0.10.0
libtpu: 0.0.40
codegen_flags: <defaults>
</compile_context>

<pallas_src>
import math
import numpy as np

import jax
import jax.numpy as jnp
from jax.experimental import pallas as pl
from jax.experimental.pallas import tpu as pltpu


def _build_pe_table(max_seq_len: int, d_model: int) -> np.ndarray:
    """Vectorized reproduction of the PyTorch __init__ double loop.

    Matches the tutorial code exactly (sin exponent 2*i/d, cos exponent
    2*(i+1)/d with i the even column index).
    """
    pos = np.arange(max_seq_len, dtype=np.float64)[:, None]        # (S, 1)
    i_even = np.arange(0, d_model, 2, dtype=np.float64)[None, :]   # (1, D/2)
    pe = np.zeros((max_seq_len, d_model), dtype=np.float64)
    pe[:, 0::2] = np.sin(pos / 10000.0 ** (2.0 * i_even / d_model))
    pe[:, 1::2] = np.cos(pos / 10000.0 ** (2.0 * (i_even + 1.0) / d_model))
    return pe.astype(np.float32)                                    # (S, D)


def _pe_kernel(scale: float):
    def kernel(x_ref, pe_ref, o_ref):
        # x_ref/o_ref: (TR, TC) row tile;  pe_ref: (1, TC), broadcast over rows.
        o_ref[...] = scale * x_ref[...] + pe_ref[...]
    return kernel


def positional_encoder(
    x: jax.Array,
    pe: jax.Array,
    d_model: int,
    *,
    tile_rows: int = 512,
    tile_cols: int = 1024,
) -> jax.Array:
    """x: (B, S, D), pe: (1, S, D) or (S, D). Returns sqrt(d_model)*x + pe."""
    B, S, D = x.shape
    pe2 = pe.reshape(1, S * D)
    # Like the PyTorch module, the input's seq-len must equal max_seq_len.
    # TODO(synk): the usual PyTorch variant slices pe[:, :x.size(1)]; this one
    # (matching the cited module) requires S == max_seq_len exactly.
    assert pe.size == S * D, "pe table must match (S, D) of the input"

    scale = float(math.sqrt(d_model))
    cols = S * D
    x2 = x.reshape(B, cols)

    # Row tile: multiple of 8, or the full row extent if B is small.
    tr = B if B <= tile_rows else max(8, (tile_rows // 8) * 8)
    # Column (lane) tile: multiple of 128, or the full extent if cols is small.
    tc = cols if cols <= tile_cols else max(128, (tile_cols // 128) * 128)

    n_ct = pl.cdiv(cols, tc)
    n_rt = pl.cdiv(B, tr)

    out2 = pl.pallas_call(
        _pe_kernel(scale),
        out_shape=jax.ShapeDtypeStruct((B, cols), x.dtype),
        # Column axis OUTER, row axis INNER (fastest): pe's block index only
        # changes once per column tile, so it is not re-fetched per row tile.
        grid=(n_ct, n_rt),
        in_specs=[
            pl.BlockSpec((tr, tc), lambda c, r: (r, c)),   # x: row tile
            pl.BlockSpec((1, tc), lambda c, r: (0, c)),    # pe: reused across rows
        ],
        out_specs=pl.BlockSpec((tr, tc), lambda c, r: (r, c)),
        compiler_params=pltpu.CompilerParams(
            dimension_semantics=("parallel", "parallel"),
        ),
    )(x2, pe2)

    return out2.reshape(B, S, D)


if __name__ == "__main__":
    key = jax.random.PRNGKey(0)

    # --- Small demo consistent with the module: batch=2, seq=8, d_model=32 ---
    B, MAX_SEQ_LEN, D_MODEL = 2, 8, 32
    x = jax.random.normal(key, (B, MAX_SEQ_LEN, D_MODEL), dtype=jnp.float32)
    pe = jnp.asarray(_build_pe_table(MAX_SEQ_LEN, D_MODEL))[None, :, :]  # (1,S,D)

    out = positional_encoder(x, pe, D_MODEL)
    out = jax.block_until_ready(out)

    ref = math.sqrt(D_MODEL) * x + pe
    np.testing.assert_allclose(np.asarray(out), np.asarray(ref),
                               rtol=1e-6, atol=1e-6)

    # --- Second check that exercises multiple column tiles (pe reuse path) ---
    B2, S2, D2 = 16, 64, 48                       # cols = 3072 -> 3 column tiles
    x2 = jax.random.normal(jax.random.PRNGKey(1), (B2, S2, D2), dtype=jnp.float32)
    pe2 = jnp.asarray(_build_pe_table(S2, D2))[None, :, :]
    out2 = jax.block_until_ready(positional_encoder(x2, pe2, D2))
    ref2 = math.sqrt(D2) * x2 + pe2
    np.testing.assert_allclose(np.asarray(out2), np.asarray(ref2),
                               rtol=1e-6, atol=1e-6)

    print("KERNEL_OK")
</pallas_src>

<mosaic_0001>
module attributes {stable_mosaic.version = 11 : i64} {
  func.func @kernel(%arg0: i32, %arg1: i32, %arg2: memref<2x256xf32, #tpu.memory_space<vmem>>, %arg3: memref<1x256xf32, #tpu.memory_space<vmem>>, %arg4: memref<2x256xf32, #tpu.memory_space<vmem>>) attributes {dimension_semantics = [#tpu.dimension_semantics<parallel>, #tpu.dimension_semantics<parallel>], iteration_bounds = array<i64: 1, 1>, scalar_prefetch = 0 : i64, scratch_operands = 0 : i64, tpu.core_type = #tpu.core_type<tc>, window_params = [{transform_indices = @transform_0, window_bounds = array<i64: 2, 256>}, {transform_indices = @transform_1, window_bounds = array<i64: 1, 256>}, {transform_indices = @transform_2, window_bounds = array<i64: 2, 256>}]} {
    %c0 = arith.constant 0 : index
    %c0_0 = arith.constant 0 : index
    %0 = vector.load %arg2[%c0, %c0_0] : memref<2x256xf32, #tpu.memory_space<vmem>>, vector<2x256xf32>
    %cst = arith.constant 5.65685415 : f32
    %1 = vector.broadcast %cst : f32 to vector<2x256xf32>
    %2 = arith.mulf %1, %0 : vector<2x256xf32>
    %c0_1 = arith.constant 0 : index
    %c0_2 = arith.constant 0 : index
    %3 = vector.load %arg3[%c0_1, %c0_2] : memref<1x256xf32, #tpu.memory_space<vmem>>, vector<1x256xf32>
    %4 = vector.broadcast %3 : vector<1x256xf32> to vector<2x256xf32>
    %5 = arith.addf %2, %4 : vector<2x256xf32>
    %c0_3 = arith.constant 0 : index
    %c0_4 = arith.constant 0 : index
    %6 = vector.load %arg4[%c0_3, %c0_4] : memref<2x256xf32, #tpu.memory_space<vmem>>, vector<2x256xf32>
    tpu.vector_store %arg4[%c0_3, %c0_4], %5 {strides = array<i32>} : memref<2x256xf32, #tpu.memory_space<vmem>>, vector<2x256xf32>,
    return
  }
  func.func @transform_0(%arg0: i32, %arg1: i32) -> (i32, i32) {
    %c0_i32 = arith.constant 0 : i32
    return %arg1, %arg0 : i32, i32
  }
  func.func @transform_1(%arg0: i32, %arg1: i32) -> (i32, i32) {
    %c0_i32 = arith.constant 0 : i32
    %c0_i32_0 = arith.constant 0 : i32
    return %c0_i32, %arg0 : i32, i32
  }
  func.func @transform_2(%arg0: i32, %arg1: i32) -> (i32, i32) {
    %c0_i32 = arith.constant 0 : i32
    return %arg1, %arg0 : i32, i32
  }
}

</mosaic_0001>

<bundles_post_ra>
// kernel: tpu_custom_call.1
= control target key start
LH: loop header
LB: loop body
LE: loop exit
PB: predicated region body
PF: predicated region fallthrough
CT: control target
= control target key end

     0   :  { %7 = vsyncpa [#allocation3], 0  ;;  %s178_s0 = inlined_call_operand.hbm [shape: f32[2,256], index: 0, kind: input, shape index: {}]   ;;  %s179_s1 = inlined_call_operand.hbm [shape: f32[1,256], index: 1, kind: input, shape index: {}]   ;;  %s180_s2 = inlined_call_operand.hbm [shape: f32[2,256], index: 2, kind: output, shape index: {}]  }
   0x1   :  { %8 = vsyncpa [#allocation6], 0 }
   0x2   :  { %9 = vsyncpa [#allocation4], 0  ;;  %s15_s11 = sshll.u32 %s178_s0, 4  ;;  %s151_s12 = smov [#allocation2]   ;;  %s16_s11 = int_to_ptr.hbm [resolvable:$true] %s15_s11 }
   0x3   :  { %s17_s13 = sshll.u32 %s151_s12, 4  ;;  %s26_s16 = sshll.u32 %s179_s1, 4  ;;  %s18_s13 = int_to_ptr.vmem [resolvable:$true] %s17_s13  ;;  %s27_s16 = int_to_ptr.hbm [resolvable:$true] %s26_s16 }
   0x4   :  { %20 = dma.hbm_to_vmem [thread:$0]  %s16_s11, 64, %s18_s13, [#allocation3]  }
   0x5   :  { %s152_s17 = smov [#allocation5]  }
   0x6   :  { %s28_s18 = sshll.u32 %s152_s17, 4  ;;  %s29_s18 = int_to_ptr.vmem [resolvable:$true] %s28_s18 }
   0x7   :  { %31 = dma.hbm_to_vmem [thread:$0]  %s27_s16, 32, %s29_s18, [#allocation6]  }
   0x8   :  { %145 = dma.done.wait [#allocation3], 64  }
   0x9   :  { %146 = vsyncadd [#allocation3], 4294967232 }
   0xa   :  { %147 = dma.done.wait [#allocation6], 32  }
   0xb   :  { %148 = vsyncadd [#allocation6], 4294967264  ;;  %v40_v0 = vld [vmem:[#allocation2] sm:$0xf]  ;;  %v42_v1 = vld [vmem:[#allocation5] sm:$0x3] }
   0xc   :  { %v44_v2 = vperm.slane %v42_v1, 0  ;;  %v45_v3 = vperm.slane %v42_v1, 1  ;;  %v41_v4 = vmul.f32 5.656854, %v40_v0  ;;  %vm47_vm0 = vcmask 1041408   ;;  %s153_s0 = smov [#allocation7]  }
   0xd   :  { %s57_s19 = sshll.u32 %s153_s0, 4  ;;  %s59_s21 = sshll.u32 %s180_s2, 4  ;;  %s58_s19 = int_to_ptr.vmem [resolvable:$true] %s57_s19  ;;  %s60_s21 = int_to_ptr.hbm [resolvable:$true] %s59_s21 }
   0xe   :  { %v46_v5 = vrot.slane %v45_v3, 6 }
  0x10   :  { %v48_v6 = vsel %vm47_vm0, %v44_v2, %v46_v5 }
  0x11   :  { %v50_v7 = vadd.f32 %v48_v6, %v41_v4 }
  0x13   :  { %51 = vst [vmem:[#allocation7] sm:$0xf] %v50_v7 }
  0x14   :  { %62 = dma.vmem_to_hbm [thread:$0]  %s58_s19, 64, %s60_s21, [#allocation4]  }
  0x15   :  { %149 = dma.done.wait [#allocation4], 64  }
  0x16   :  { %150 = vsyncadd [#allocation4], 4294967232 }
  0x17   :  { %67 = vsyncpa [#allocation3], 1 }
  0x18   :  { %68 = vsyncpa [#allocation6], 1 }
  0x19   :  { %69 = vsyncpa [#allocation4], 1 }

</bundles_post_ra>
